<compile_context>
chip_gen: v7x
topology: tpu7x:2x2x1
jax: 0.10.0
libtpu: 0.0.40
codegen_flags: <defaults>
</compile_context>

<pallas_src>
import math

import jax
import jax.numpy as jnp
from jax.experimental import pallas as pl
from jax.experimental.pallas import tpu as pltpu


def _make_rope_kernel(theta: float):
    """Build a RoPE kernel for a fixed rotary base `theta` (Python float)."""

    def rope_kernel(pos_ref, x_ref, o_ref):
        """One (tile_rows, d_k) lane-dense block of interleaved RoPE.

        pos_ref: (tile_rows, 1)    int32 token positions (rows on sublanes)
        x_ref:   (tile_rows, d_k)  input block  (lane-dense)
        o_ref:   (tile_rows, d_k)  output block (lane-dense)
        """
        d = x_ref.shape[-1]

        # (1, d) helper rows rebuilt on a single vreg per grid step (negligible
        # cost) -- replaces a third pallas_call input and confines the parity
        # machinery to one vreg instead of every data vreg.
        lane = jax.lax.broadcasted_iota(jnp.int32, (1, d), 1)
        odd_bit = lane & 1                                           # 0,1,0,1,...
        is_even = odd_bit == 0                                       # (1, d) bool
        sign_row = jnp.where(is_even, jnp.float32(-1.0), jnp.float32(1.0))
        pair_idx = (lane - odd_bit).astype(jnp.float32) * jnp.float32(0.5)
        # inv_row[2i] = inv_row[2i+1] = theta ** (-2*i / d) = exp(-2*i*ln(theta)/d)
        inv_row = jnp.exp(pair_idx * jnp.float32(-2.0 * math.log(theta) / d))

        pos = pos_ref[...].astype(jnp.float32)                       # (tR, 1)
        ang = pos * inv_row                                          # (tR, d) VPU bcast
        c = jnp.cos(ang)                                             # EUP
        s = jnp.sin(ang) * sign_row                                  # EUP + 1 vmul
        # TODO(synk): on v7x-bf16 / v5e the two transcendentals per element can
        # become the binding unit; a head-reuse grid (cos/sin computed once per
        # (batch, position) tile into VMEM scratch under pl.when(h == 0) and
        # shared across heads) or an amortized cos/sin table would remove most
        # or all of this EUP work.

        x = x_ref[...].astype(jnp.float32)                           # (tR, d)

        # Lane pair-swap [x0,x1,x2,x3,...] -> [x1,x0,x3,x2,...]: two static XLU
        # rotations + one parity select.  The roll wrap-around lanes land only
        # on the wrong parity and are masked out by the select -- preserve this
        # invariant if the parity mask is ever replaced.
        x_next = pltpu.roll(x, shift=d - 1, axis=1)                  # x[(j+1) % d]
        x_prev = pltpu.roll(x, shift=1, axis=1)                      # x[(j-1) % d]
        x_pair = jnp.where(is_even, x_next, x_prev)

        # out[2i]   = x[2i]   * cos_i - x[2i+1] * sin_i
        # out[2i+1] = x[2i+1] * cos_i + x[2i]   * sin_i
        o_ref[...] = (x * c + x_pair * s).astype(o_ref.dtype)

    return rope_kernel


def _pick_tile_rows(rows: int, d_k: int, itemsize: int,
                    target_block_bytes: int = 4 * 1024 * 1024) -> int:
    """Rows per grid step.

    Targets ~4 MiB of x per block (amortizes the ~0.35 us per-step overhead;
    keeps the double-buffered in+out footprint at ~16-17 MiB, safe on the
    32 MiB scoped-VMEM default of v5e/v6e/v7x), while guaranteeing >= 2 grid
    steps whenever possible so the 'parallel' axis can shard across v7x's two
    TensorCores.  tile_rows scales automatically with dtype and d_k.
    """
    if rows <= 8:
        return rows                              # single block == full array dims
    t = (target_block_bytes // (d_k * itemsize)) // 8 * 8
    t = max(8, t)
    half_up = (((rows + 1) // 2) + 7) // 8 * 8   # ceil(rows/2), rounded up to 8
    return min(t, half_up)


def rope_forward(x, token_positions, *, theta, d_k, max_seq_len, donate_x=False):
    """Pallas implementation of RotaryPositionalEmbedding.forward.

    x:               (..., T, d_k) float32 / bfloat16
    token_positions: broadcastable to x.shape[:-1], int, values in [0, max_seq_len)
    returns:         same shape / dtype as x
    """
    assert d_k % 2 == 0, "d_k must be even"
    assert x.shape[-1] == d_k
    del max_seq_len  # positions are used directly inside the kernel

    orig_shape = x.shape
    token_positions = jnp.broadcast_to(token_positions, orig_shape[:-1])

    rows = 1
    for dim in orig_shape[:-1]:
        rows *= dim

    # Contiguous reshapes: metadata only, no extra HBM pass. x keeps its dtype
    # (bf16 I/O halves HBM bytes); all math inside the kernel is f32.
    x2 = x.reshape(rows, d_k)
    pos2 = token_positions.reshape(rows, 1).astype(jnp.int32)

    t_rows = _pick_tile_rows(rows, d_k, x2.dtype.itemsize)
    grid = (pl.cdiv(rows, t_rows),)

    # TODO(synk): for (B, H, T, d_k) inputs with positions shared across heads,
    # add a head grid axis + cos/sin VMEM scratch filled under pl.when(h == 0)
    # so the transcendentals are computed once per (B, T) tile, not per head.

    kernel = _make_rope_kernel(float(theta))
    out = pl.pallas_call(
        kernel,
        out_shape=jax.ShapeDtypeStruct((rows, d_k), x.dtype),
        grid_spec=pltpu.PrefetchScalarGridSpec(
            num_scalar_prefetch=0,
            grid=grid,
            in_specs=[
                pl.BlockSpec((t_rows, 1), lambda r: (r, 0)),     # token positions
                pl.BlockSpec((t_rows, d_k), lambda r: (r, 0)),   # x (lane-dense)
            ],
            out_specs=pl.BlockSpec((t_rows, d_k), lambda r: (r, 0)),
        ),
        compiler_params=pltpu.CompilerParams(
            dimension_semantics=("parallel",),
            # ~4 MiB x-block => ~16-17 MiB double-buffered in+out: comfortably
            # inside the scoped-VMEM limit on v5e/v6e/v7x.
            vmem_limit_bytes=32 * 1024 * 1024,
        ),
        # Callers that never reuse pre-RoPE activations can alias x -> out to
        # drop the extra HBM output allocation (useful on 16 GiB v5e).
        input_output_aliases=({1: 0} if donate_x else {}),
    )(pos2, x2)

    return out.reshape(orig_shape)


def rope_reference(x, token_positions, *, theta, d_k, max_seq_len):
    """Pure-JAX reference mirroring the PyTorch module exactly."""
    d_half = d_k // 2
    idx = jnp.arange(d_half, dtype=jnp.float32)
    inv_freq = theta ** (-2.0 * idx / d_k)
    positions = jnp.arange(max_seq_len, dtype=jnp.float32)
    angles = positions[:, None] * inv_freq[None, :]          # (max_seq_len, d_half)
    cos_tbl = jnp.cos(angles)
    sin_tbl = jnp.sin(angles)
    token_positions = jnp.broadcast_to(token_positions, x.shape[:-1])
    cos = cos_tbl[token_positions]                            # (..., T, d_half)
    sin = sin_tbl[token_positions]
    xp = x.reshape(*x.shape[:-1], d_half, 2)
    x0 = xp[..., 0].astype(jnp.float32)
    x1 = xp[..., 1].astype(jnp.float32)
    rot = jnp.stack([x0 * cos - x1 * sin, x0 * sin + x1 * cos], axis=-1)
    return rot.reshape(x.shape).astype(x.dtype)


if __name__ == "__main__":
    theta = 10000.0
    d_k = 128            # lane-dense head dim (full 128-lane blocks)
    max_seq_len = 16

    key = jax.random.PRNGKey(0)
    kx, kp, kx2, kp2 = jax.random.split(key, 4)

    # Case 1: f32, (B, T, d_k)
    B, T = 2, 8
    x = jax.random.normal(kx, (B, T, d_k), dtype=jnp.float32)
    pos = jax.random.randint(kp, (B, T), 0, max_seq_len, dtype=jnp.int32)
    out = jax.block_until_ready(
        rope_forward(x, pos, theta=theta, d_k=d_k, max_seq_len=max_seq_len))
    ref = rope_reference(x, pos, theta=theta, d_k=d_k, max_seq_len=max_seq_len)
    assert out.shape == x.shape and out.dtype == x.dtype
    assert jnp.allclose(out, ref, atol=1e-4, rtol=1e-4), "f32 mismatch vs reference"

    # Case 2: bf16, (B, H, T, d_k) -- leading dims flattened, bf16 I/O path.
    Bh, H, Th = 2, 2, 8
    xb = jax.random.normal(kx2, (Bh, H, Th, d_k), dtype=jnp.bfloat16)
    posb = jax.random.randint(kp2, (Bh, H, Th), 0, max_seq_len, dtype=jnp.int32)
    outb = jax.block_until_ready(
        rope_forward(xb, posb, theta=theta, d_k=d_k, max_seq_len=max_seq_len))
    refb = rope_reference(xb, posb, theta=theta, d_k=d_k, max_seq_len=max_seq_len)
    assert outb.shape == xb.shape and outb.dtype == xb.dtype
    assert jnp.allclose(outb.astype(jnp.float32), refb.astype(jnp.float32),
                        atol=3e-2, rtol=3e-2), "bf16 mismatch vs reference"

    print("KERNEL_OK")
</pallas_src>

<mosaic_0001>
module attributes {stable_mosaic.version = 11 : i64} {
  func.func @rope_kernel(%arg0: i32, %arg1: memref<8x1xi32, #tpu.memory_space<vmem>>, %arg2: memref<8x128xf32, #tpu.memory_space<vmem>>, %arg3: memref<8x128xf32, #tpu.memory_space<vmem>>) attributes {dimension_semantics = [#tpu.dimension_semantics<parallel>], iteration_bounds = array<i64: 2>, scalar_prefetch = 0 : i64, scratch_operands = 0 : i64, tpu.core_type = #tpu.core_type<tc>, window_params = [{transform_indices = @transform_0, window_bounds = array<i64: 8, 1>}, {transform_indices = @transform_1, window_bounds = array<i64: 8, 128>}, {transform_indices = @transform_2, window_bounds = array<i64: 8, 128>}]} {
    %0 = tpu.iota {dimensions = array<i32: 1>} : vector<1x128xi32>
    %c1_i32 = arith.constant 1 : i32
    %1 = vector.broadcast %c1_i32 : i32 to vector<1x128xi32>
    %2 = arith.andi %0, %1 : vector<1x128xi32>
    %c0_i32 = arith.constant 0 : i32
    %3 = vector.broadcast %c0_i32 : i32 to vector<1x128xi32>
    %4 = arith.cmpi eq, %2, %3 : vector<1x128xi32>
    %cst = arith.constant -1.000000e+00 : f32
    %cst_0 = arith.constant 1.000000e+00 : f32
    %5 = vector.broadcast %cst : f32 to vector<1x128xf32>
    %6 = vector.broadcast %cst_0 : f32 to vector<1x128xf32>
    %7 = arith.select %4, %5, %6 : vector<1x128xi1>, vector<1x128xf32>
    %8 = arith.subi %0, %2 : vector<1x128xi32>
    %9 = arith.sitofp %8 : vector<1x128xi32> to vector<1x128xf32>
    %cst_1 = arith.constant 5.000000e-01 : f32
    %10 = vector.broadcast %cst_1 : f32 to vector<1x128xf32>
    %11 = arith.mulf %9, %10 : vector<1x128xf32>
    %cst_2 = arith.constant -0.14391157 : f32
    %12 = vector.broadcast %cst_2 : f32 to vector<1x128xf32>
    %13 = arith.mulf %11, %12 : vector<1x128xf32>
    %14 = math.exp %13 : vector<1x128xf32>
    %c0 = arith.constant 0 : index
    %c0_3 = arith.constant 0 : index
    %15 = vector.load %arg1[%c0, %c0_3] : memref<8x1xi32, #tpu.memory_space<vmem>>, vector<8x1xi32>
    %16 = arith.sitofp %15 : vector<8x1xi32> to vector<8x1xf32>
    %17 = vector.broadcast %16 : vector<8x1xf32> to vector<8x128xf32>
    %18 = vector.broadcast %14 : vector<1x128xf32> to vector<8x128xf32>
    %19 = arith.mulf %17, %18 : vector<8x128xf32>
    %20 = math.cos %19 : vector<8x128xf32>
    %21 = math.sin %19 : vector<8x128xf32>
    %22 = vector.broadcast %7 : vector<1x128xf32> to vector<8x128xf32>
    %23 = arith.mulf %21, %22 : vector<8x128xf32>
    %c0_4 = arith.constant 0 : index
    %c0_5 = arith.constant 0 : index
    %24 = vector.load %arg2[%c0_4, %c0_5] : memref<8x128xf32, #tpu.memory_space<vmem>>, vector<8x128xf32>
    %c127_i32 = arith.constant 127 : i32
    %25 = tpu.dynamic_rotate %24 by %c127_i32 dim 1 : vector<8x128xf32>, i32 -> vector<8x128xf32>
    %c1_i32_6 = arith.constant 1 : i32
    %26 = tpu.dynamic_rotate %24 by %c1_i32_6 dim 1 : vector<8x128xf32>, i32 -> vector<8x128xf32>
    %27 = vector.shape_cast %4 : vector<1x128xi1> to vector<1x128xi1>
    %28 = vector.broadcast %27 : vector<1x128xi1> to vector<8x128xi1>
    %29 = arith.select %28, %25, %26 : vector<8x128xi1>, vector<8x128xf32>
    %30 = arith.mulf %24, %20 : vector<8x128xf32>
    %31 = arith.mulf %29, %23 : vector<8x128xf32>
    %32 = arith.addf %30, %31 : vector<8x128xf32>
    %c0_7 = arith.constant 0 : index
    %c0_8 = arith.constant 0 : index
    %33 = vector.load %arg3[%c0_7, %c0_8] : memref<8x128xf32, #tpu.memory_space<vmem>>, vector<8x128xf32>
    tpu.vector_store %arg3[%c0_7, %c0_8], %32 {strides = array<i32>} : memref<8x128xf32, #tpu.memory_space<vmem>>, vector<8x128xf32>,
    return
  }
  func.func @transform_0(%arg0: i32) -> (i32, i32) {
    %c0_i32 = arith.constant 0 : i32
    %c0_i32_0 = arith.constant 0 : i32
    return %arg0, %c0_i32 : i32, i32
  }
  func.func @transform_1(%arg0: i32) -> (i32, i32) {
    %c0_i32 = arith.constant 0 : i32
    %c0_i32_0 = arith.constant 0 : i32
    return %arg0, %c0_i32 : i32, i32
  }
  func.func @transform_2(%arg0: i32) -> (i32, i32) {
    %c0_i32 = arith.constant 0 : i32
    %c0_i32_0 = arith.constant 0 : i32
    return %arg0, %c0_i32 : i32, i32
  }
}

</mosaic_0001>

<bundles_post_ra>
// kernel: tpu_custom_call.1
= control target key start
LH: loop header
LB: loop body
LE: loop exit
PB: predicated region body
PF: predicated region fallthrough
CT: control target
= control target key end

     0   :  { %7 = vsyncpa [#allocation3], 0  ;;  %s798_s0 = inlined_call_operand.vmem [shape: s32[16,1], index: 0, kind: input, shape index: {}]   ;;  %s799_s1 = inlined_call_operand.vmem [shape: f32[16,128], index: 1, kind: input, shape index: {}]   ;;  %s800_s2 = inlined_call_operand.hbm [shape: f32[16,128], index: 2, kind: output, shape index: {}]  }
   0x1   :  { %9 = vsyncpa [#allocation3 + $0x1], 0  ;;  %s649_s9 = smov 0   ;;  %s651_s10 = smov 0  }
   0x2   :  { %s653_s11 = smov 0   ;;  %s655_s12 = smov 0  }
   0x3 LB: > { %s670_s13 = sadd.s32 4294967295, %s621_s12   ;;  %s480_s14 = sadd.s32 4294967294, %s621_s12   ;;  %s621_s12 = sphi %s655_s12, %s808_s12   ;;  %s617_s11 = sphi %s653_s11, %s807_s11   ;;  %s613_s10 = sphi %s651_s10, %s806_s10   ;;  %s609_s9 = sphi %s649_s9, %s805_s9  }
   0x4   : > { %s674_s15 = sadd.s32 1, %s621_s12   ;;  %s74_s16 = sadd.s32 1, %s617_s11 }
   0x5   : > { %s71_s17 = ssub.s32 %s621_s12, %s674_s15  ;;  %p84_p0 = scmp.ne.s32.totalorder %s617_s11, %s613_s10 }
   0x6   : > { %p72_p1 = scmp.eq.s32.totalorder %s71_s17, 0  ;;  %p85_p2 = scmp.eq.s32.totalorder %s670_s13, 1 }
   0x7   : > { %p90_p3 = scmp.ne.s32.totalorder %s613_s10, %s609_s9  ;;  %p91_p4 = scmp.eq.s32.totalorder %s480_s14, 1 }
   0x8   : > { %s685_s18 = scalar_select %p72_p1, %s617_s11, %s74_s16  }
   0x9   : > { %p687_p5 = por %p85_p2, %p84_p0  ;;  %p691_p6 = por %p91_p4, %p90_p3 }
   0xa   : > { %p483_p7 = scmp.ge.s32.totalorder %s621_s12, 1  ;;  %p123_p8 = scmp.lt.s32.totalorder %s621_s12, 3 }
   0xc   : > { %p124_p9 = pnand %p483_p7, %p123_p8 }
   0xd   : > { %p148_p10 = scmp.lt.s32.totalorder (!%p124_p9), %s670_s13, 1  ;;  %v623_v0 = vmov (!%p124_p9), 0   ;;  %s624_s29 = smov (!%p124_p9), 1   ;;  %v156_v4 = vlaneseq (!%p124_p9)  ;;  %v626_v25 = vmov (!%p124_p9), 683565275  }
   0xe   : > { %127 = sbr.rel (%p124_p9) target bundleno = 257 (0x101), region = 28  ;;  %552 = vset.pattern.permute.xlu0 (!%p124_p9), %v623_v0  ;;  %s625_s30 = smov (!%p124_p9), 127   ;;  %v627_v27 = vmov (!%p124_p9), 2475754826   ;;  %v628_v30 = vmov (!%p124_p9), 2131351028  }
   0xf   : > { %v709_v5 = vand.u32 (!%p124_p9), 127, %v156_v4  ;;  %v629_v33 = vmov (!%p124_p9), 2102212464   ;;  %v630_v36 = vmov (!%p124_p9), 920167782   ;;  %s145_s3 = sand.u32 (!%p124_p9), 1, %s613_s10  }
  0x10   : > { %v631_v39 = vmov (!%p124_p9), 1326507024   ;;  %s484_s4 = sshll.u32 (!%p124_p9), %s145_s3, 3  ;;  %s496_s5 = sshll.u32 (!%p124_p9), %s670_s13, 7 }
  0x11   : > { %v158_v6 = vand.u32 (!%p124_p9), 1, %v709_v5  ;;  %s147_s6 = scalar_lea.vmem (!%p124_p9), [#allocation2], %s484_s4  ;;  %s754_s16 = scalar_lea.hbm (!%p124_p9), %s800_s2, %s496_s5 }
  0x12   : > { %s409_s7 = sshll.u32 (!%p124_p9), %s147_s6, 4  ;;  %s396_s17 = scalar_lea.sflag (!%p124_p9), [#allocation3], %s145_s3  ;;  %s756_s7 = int_to_ptr.vmem [resolvable:$true] %s409_s7 }
  0x13   : > { %v161_v7 = vsub.s32 (!%p124_p9), %v709_v5, %v158_v6  ;;  %vm737_vm9 = vcmp.eq.s32.totalorder (!%p124_p9), %v158_v6, 0 }
  0x15   : > { %s149_s21 = scalar_select %p148_p10, %s670_s13, 1  ;;  %v162_v8 = vcvt.s32.f32 %v161_v7 }
  0x16   : > { %s559_s13 = scalar_lea.vmem %s756_s7, 128 }
  0x17   : > { %s485_s22 = sshll.u32 %s149_s21, 3  ;;  %v163_v9 = vmul.f32 0.5, %v162_v8  ;;  %p560_p11 = scmp.ne.s32.totalorder %s756_s7, %s559_s13 }
  0x18   : > { %s151_s25 = scalar_lea.vmem %s798_s0, %s485_s22  ;;  %s155_s28 = scalar_lea.vmem %s799_s1, %s485_s22 }
  0x19   : > { %v167_v1 = vld [vmem:[%s151_s25] sm:$0xff]  ;;  %v164_v10 = vmul.f32 -0.14391157, %v163_v9  ;;  %p561_p12 = pnand %p560_p11, %p687_p5  ;;  %s633_s21 = smov [#allocation2]  }
  0x1a   : > { %v705_v2 = vld [vmem:[%s155_s28] sm:$0xff]  ;;  %v168_v3 = vcvt.s32.f32 %v167_v1  ;;  %s563_s22 = sshll.u32 %s633_s21, 4  ;;  %s564_s22 = int_to_ptr.vmem [resolvable:$false] %s563_s22 }
  0x1b   : > { %386 = vrot.lane.b32.xlu1 %v705_v2, %s624_s29  ;;  %v165_v11 = vmul.f32 1.442695, %v164_v10  ;;  %p562_p13 = pneg %p561_p12  ;;  %s565_s23 = scalar_lea.vmem %s564_s22, 256 }
  0x1c   : > { %171 = vperm.xlu0 %552, %v168_v3   ;;  %p566_p0 = scmp.lt.s32.totalorder %s756_s7, %s564_s22  ;;  %p567_p1 = scmp.lt.s32.totalorder %s565_s23, %s559_s13 }
  0x1d   : > { %553 = vpow2.f32 %v165_v11 }
  0x1e   : > { %p568_p2 = por %p567_p1, %p566_p0 }
  0x20   : > { %384 = vrot.lane.b32.xlu0 %v705_v2, %s625_s30  ;;  %p569_p3 = pnand %p568_p2, %p562_p13 }
  0x27   : > { %v554_v12 = vpop.eup %553 }
  0x9b   : > { %v172_v13 = vpop.permute.xlu0 %171 }
  0x9c   : > { %v715_v14 = vmul.f32 %v554_v12, %v172_v13 }
  0x9e   : > { %v178_v15 = vand.u32 2139095040, %v715_v14  ;;  %v175_v19 = vand.u32 2147483647, %v715_v14  ;;  %vm177_vm7 = vcmp.lt.s32.totalorder %v715_v14, 0 }
  0xa0   : > { %v179_v16 = vshrl.u32 %v178_v15, 23  ;;  %v182_v22 = vand.u32 8388607, %v175_v19  ;;  %vm176_vm8 = vcmp.le.f32.partialorder %v175_v19, 0.7853982 }
  0xa2   : > { %v487_v17 = vadd.s32 4294967169, %v179_v16  ;;  %v183_v41 = vor.u32 8388608, %v182_v22 }
  0xa4   : > { %v185_v18 = vadd.s32 1, %v487_v17  ;;  %v223_v55 = vshll.u32 %v183_v41, 8 }
  0xa6   : > { %vm186_vm0 = vcmp.gt.s32.totalorder %v185_v18, 0 }
  0xa7   : > { %v187_v20 = vsel %vm186_vm0, %v185_v18, 0  ;;  %vm267_vm0 = vweird.f32 %v715_v14 }
  0xa8   : > { %v189_v21 = vand.u32 31, %v187_v20  ;;  %v188_v24 = vshrl.u32 %v187_v20, 5 }
  0xaa   : > { %v190_v23 = vsub.s32 32, %v189_v21  ;;  %v192_v26 = vshll.u32 %v626_v25, %v189_v21  ;;  %v195_v28 = vshll.u32 %v627_v27, %v189_v21  ;;  %v198_v32 = vshll.u32 %v628_v30, %v189_v21 }
  0xab   : > { %v201_v35 = vshll.u32 %v629_v33, %v189_v21  ;;  %v204_v38 = vshll.u32 %v630_v36, %v189_v21  ;;  %vm207_vm1 = vcmp.lt.s32.totalorder %v188_v24, 1  ;;  %vm210_vm2 = vcmp.lt.s32.totalorder %v188_v24, 4 }
  0xac   : > { %v193_v29 = vshrl.u32 %v627_v27, %v190_v23  ;;  %v196_v31 = vshrl.u32 %v628_v30, %v190_v23  ;;  %v199_v34 = vshrl.u32 %v629_v33, %v190_v23  ;;  %v202_v37 = vshrl.u32 %v630_v36, %v190_v23 }
  0xad   : > { %v205_v40 = vshrl.u32 %v631_v39, %v190_v23  ;;  %v191_v50 = vshrl.u32 %v626_v25, %v190_v23  ;;  %vm209_vm3 = vcmp.lt.s32.totalorder %v188_v24, 3  ;;  %vm208_vm4 = vcmp.lt.s32.totalorder %v188_v24, 2 }
  0xae   : > { %v194_v42 = vor.u32 %v193_v29, %v192_v26  ;;  %v197_v43 = vor.u32 %v196_v31, %v195_v28  ;;  %v200_v44 = vor.u32 %v199_v34, %v198_v32  ;;  %v203_v45 = vor.u32 %v202_v37, %v201_v35 }
  0xaf   : > { %v206_v46 = vor.u32 %v205_v40, %v204_v38 }
  0xb0   : > { %v212_v47 = vsel %vm210_vm2, %v200_v44, 2102212464  ;;  %v215_v48 = vsel %vm207_vm1, %v194_v42, %v197_v43  ;;  %v219_v49 = vsel %vm207_vm1, %v197_v43, %v200_v44  ;;  %v216_v51 = vsel %vm210_vm2, %v203_v45, 920167782 }
  0xb1   : > { %v220_v52 = vsel %vm210_vm2, %v206_v46, 1326507024  ;;  %v217_v53 = vsel %vm209_vm3, %v200_v44, %v216_v51  ;;  %v211_v56 = vsel %vm207_vm1, %v191_v50, %v194_v42  ;;  %v213_v57 = vsel %vm209_vm3, %v197_v43, %v212_v47  ;;  %v387_v46 = vpop.permute.xlu1 %386  ;;  %v385_v47 = vpop.permute.xlu0 %384 }
  0xb2   : > { %v221_v54 = vsel %vm209_vm3, %v203_v45, %v220_v52  ;;  %v218_v58 = vsel %vm208_vm4, %v215_v48, %v217_v53  ;;  %v214_v0 = vsel %vm208_vm4, %v211_v56, %v213_v57  ;;  %v632_v43 = vmov 1.0  }
  0xb3   : > { %v222_v59 = vsel %vm208_vm4, %v219_v49, %v221_v54  ;;  %v724_v62 = vmul.u32.u64.low %v223_v55, %v218_v58  ;;  %v725_v63 = vmul.u32.u64.high %v223_v55, %v218_v58, %v724_v62  ;;  %v230_v3 = vmul.u32 %v223_v55, %v214_v0 }
  0xb4   : > { %v721_v60 = vmul.u32.u64.low %v223_v55, %v222_v59  ;;  %v722_v61 = vmul.u32.u64.high %v223_v55, %v222_v59, %v721_v60  ;;  %v160_v44 = vsel %vm737_vm9, -1.0, %v632_v43  ;;  %v390_v54 = vsel %vm737_vm9, %v385_v47, %v387_v46 }
  0xb5   : > { %v233_v1 = vadd.s32 1, %v725_v63 }
  0xb6   : > { %vm232_vm5 = vc.u32 %v722_v61, %v724_v62  ;;  %v231_v18 = vadd.s32 %v724_v62, %v722_v61 }
  0xb7   : > { %v234_v4 = vsel %vm232_vm5, %v233_v1, %v725_v63 }
  0xb8   : > { %v235_v7 = vadd.s32 %v234_v4, %v230_v3 }
  0xba   : > { %v236_v8 = vadd.s32 536870912, %v235_v7 }
  0xbc   : > { %v237_v9 = vshrl.u32 %v236_v8, 30 }
  0xbe   : > { %v238_v10 = vshll.u32 %v237_v9, 30  ;;  %v261_v31 = vsub.s32 4, %v237_v9 }
  0xc0   : > { %v239_v11 = vsub.s32 %v235_v7, %v238_v10  ;;  %v262_v34 = vsel %vm177_vm7, %v261_v31, %v237_v9 }
  0xc1   : > { %v264_v36 = vsel %vm176_vm8, 0, %v262_v34 }
  0xc2   : > { %v241_v12 = vsub.s32 0, %v239_v11  ;;  %v371_v37 = vadd.s32 3, %v264_v36  ;;  %v268_v38 = vand.u32 3, %v264_v36 }
  0xc4   : > { %v488_v13 = vmin.u32 %v241_v12, %v239_v11  ;;  %v372_v39 = vand.u32 3, %v371_v37  ;;  %vm273_vm10 = vcmp.eq.s32.totalorder %v268_v38, 2  ;;  %vm270_vm12 = vcmp.eq.s32.totalorder %v268_v38, 0 }
  0xc5   : > { %vm269_vm14 = vcmp.lt.s32.totalorder %v268_v38, 2 }
  0xc6   : > { %v243_v15 = vclz %v488_v13  ;;  %vm377_vm11 = vcmp.eq.s32.totalorder %v372_v39, 2  ;;  %vm374_vm13 = vcmp.eq.s32.totalorder %v372_v39, 0  ;;  %vm373_vm15 = vcmp.lt.s32.totalorder %v372_v39, 2 }
  0xc8   : > { %v489_v16 = vadd.s32 4294967294, %v243_v15 }
  0xca   : > { %vm490_vm6 = vcmp.lt.s32.totalorder %v489_v16, 0 }
  0xcb   : > { %v246_v17 = vsel %vm490_vm6, 0, %v489_v16 }
  0xcc   : > { %v247_v20 = vsub.s32 32, %v246_v17  ;;  %v251_v21 = vsub.s32 4294967266, %v246_v17  ;;  %v248_v22 = vshll.u32 %v239_v11, %v246_v17 }
  0xce   : > { %v249_v23 = vshrl.u32 %v231_v18, %v247_v20  ;;  %v252_v24 = vadd.s32 127, %v251_v21 }
  0xd0   : > { %v250_v25 = vor.u32 %v249_v23, %v248_v22  ;;  %v253_v26 = vshll.u32 %v252_v24, 23 }
  0xd2   : > { %v254_v27 = vor.u32 4788187, %v253_v26  ;;  %v257_v29 = vcvt.s32.f32 %v250_v25 }
  0xd4   : > { %v255_v28 = vand.u32 2147483647, %v254_v27 }
  0xd6   : > { %v258_v30 = vmul.f32 %v257_v29, %v255_v28 }
  0xd8   : > { %v259_v32 = vxor.u32 2147483648, %v258_v30 }
  0xda   : > { %v260_v33 = vsel %vm177_vm7, %v259_v32, %v258_v30 }
  0xdb   : > { %v263_v35 = vsel %vm176_vm8, %v715_v14, %v260_v33 }
  0xdc   : > { %555 = vcosq.f32 %v263_v35 }
  0xdd   : > { %557 = vsinq.f32 %v263_v35 }
  0xe6   : > { %v556_v41 = vpop.eup %555 }
  0xe7   : > { %v558_v19 = vpop.eup %557  ;;  %v274_v42 = vxor.u32 2147483648, %v556_v41 }
  0xe8   : > { %v271_v45 = vxor.u32 2147483648, %v558_v19 }
  0xe9   : > { %v275_v5 = vsel %vm273_vm10, %v274_v42, %v558_v19  ;;  %v379_v6 = vsel %vm377_vm11, %v274_v42, %v558_v19 }
  0xea   : > { %v272_v48 = vsel %vm270_vm12, %v556_v41, %v271_v45  ;;  %v376_v49 = vsel %vm374_vm13, %v556_v41, %v271_v45 }
  0xeb   : > { %v276_v50 = vsel %vm269_vm14, %v272_v48, %v275_v5  ;;  %v380_v51 = vsel %vm373_vm15, %v376_v49, %v379_v6 }
  0xec   : > { %v277_v52 = vsel %vm267_vm0, nan, %v276_v50  ;;  %v381_v53 = vsel %vm267_vm0, nan, %v380_v51 }
  0xed   : > { %v382_v55 = vmul.f32 %v381_v53, %v160_v44  ;;  %v391_v56 = vmul.f32 %v705_v2, %v277_v52 }
  0xef   : > { %v392_v57 = vmul.f32 %v390_v54, %v382_v55 }
  0xf1   : > { %v393_v58 = vadd.f32 %v392_v57, %v391_v56 }
  0xf3   : > { %394 = vst [vmem:[%s147_s6] sm:$0xff] %v393_v58 }
  0xf4   : > { %572 = shalt.err (!%p569_p3)
}
  0xf5   : > { %s573_s24 = scalar_lea.hbm %s754_s16, 128  ;;  %s577_s27 = scalar_lea.hbm %s800_s2, 256 }
  0xf6   : > { %p574_p4 = scmp.ne.s32.totalorder %s754_s16, %s573_s24  ;;  %p578_p9 = scmp.lt.u32.totalorder %s754_s16, %s800_s2 }
  0xf7   : > { %p579_p10 = scmp.lt.u32.totalorder %s577_s27, %s573_s24  ;;  %p581_p12 = scmp.lt.u32.totalorder %s573_s24, %s754_s16 }
  0xf8   : > { %p575_p7 = pnand %p574_p4, %p687_p5 }
  0xf9   : > { %p580_p11 = por %p579_p10, %p578_p9 }
  0xfa   : > { %p576_p8 = pneg %p575_p7 }
  0xfb   : > { %p582_p13 = por %p581_p12, %p580_p11 }
  0xfd   : > { %p583_p0 = pnand %p582_p13, %p576_p8 }
  0xff   : > { %586 = shalt.err (!%p583_p0)
}
 0x100   : > { %503 = dma.vmem_to_hbm [thread:$0]  (%p687_p5), %s756_s7, 128, %s754_s16, %s396_s17  }
 0x101 PF: > { %p509_p1 = scmp.ge.s32.totalorder %s621_s12, 2  ;;  %s421_s30 = sand.u32 1, %s609_s9  }
 0x102   : > { %s422_s3 = scalar_lea.sflag [#allocation3], %s421_s30 }
 0x103   : > { %p506_p2 = pnand %p509_p1, %p691_p6 }
 0x105   : > { %604 = dma.done.wait (!%p506_p2), %s422_s3, 128  }
 0x106   : > { %606 = vsyncadd (!%p506_p2), %s422_s3, 4294967168  ;;  %p12_p3 = scmp.ge.s32.totalorder %s674_s15, 4   ;;  %s805_s9 = smov %s613_s10 }
 0x107   : > { %s806_s10 = smov %s617_s11  ;;  %s807_s11 = smov %s685_s18 }
 0x108   : > { %s808_s12 = smov %s674_s15  ;;  %14 = sbr.rel (!%p12_p3) target bundleno = 3 (0x3), region = 66 }
 0x10f   :  { %427 = vsyncpa [#allocation3], 1 }
 0x110   :  { %429 = vsyncpa [#allocation3 + $0x1], 1 }

</bundles_post_ra>
